<compile_context>
chip_gen: v7x
topology: tpu7x:2x2x1
jax: 0.10.0
libtpu: 0.0.40
codegen_flags: <defaults>
</compile_context>

<pallas_src>
from functools import partial

import jax
import jax.numpy as jnp
from jax.experimental import pallas as pl
from jax.experimental.pallas import tpu as pltpu


_LANE_COLS = 1024                 # lane-dense fast-path width (multiple of 128)
_MAX_BLOCK_ROWS = 1024            # per-tile row cap
_MAX_TILE_BYTES = 4 * 1024 * 1024 # <= 4 MiB/tile -> <= 16 MiB double-buffered in+out


def _round_up(n, m):
    return ((n + m - 1) // m) * m


def _sublane_multiple(dtype):
    # f32 -> 8, bf16 -> 16, int8/fp8 -> 32 sublane packing.
    return max(8, 32 // jnp.dtype(dtype).itemsize)


# ----------------------------------------------------------------------------
# Kernel: elementwise multi-spike activation on one [block_rows, cols] tile
# ----------------------------------------------------------------------------
def _multispike_kernel(x_ref, o_ref):
    x = x_ref[...].astype(jnp.float32)
    y = jnp.floor(jnp.clip(4.0 * x, 0.0, 4.0) + 0.5) * 0.25
    o_ref[...] = y.astype(o_ref.dtype)


def _pick_block_rows(rows, cols, dtype):
    """Rows per tile: multiple of the sublane packing, <= ~4 MiB, >= ~4 grid steps."""
    sub = _sublane_multiple(dtype)
    if rows <= sub:
        return rows                                    # full-dim block (always legal)
    itemsize = jnp.dtype(dtype).itemsize
    by_vmem = max(sub, (_MAX_TILE_BYTES // max(1, cols * itemsize)) // sub * sub)
    target = _round_up(pl.cdiv(rows, 4), sub)          # aim for >= 4 pipeline steps
    return max(sub, min(_MAX_BLOCK_ROWS, by_vmem, target))


def _call_tiled(x2d, rows, cols, dtype, *, alias):
    block_rows = _pick_block_rows(rows, cols, dtype)
    grid = (pl.cdiv(rows, block_rows),)
    return pl.pallas_call(
        _multispike_kernel,
        out_shape=jax.ShapeDtypeStruct((rows, cols), dtype),
        grid=grid,
        in_specs=[pl.BlockSpec((block_rows, cols), lambda i: (i, 0))],
        out_specs=pl.BlockSpec((block_rows, cols), lambda i: (i, 0)),
        input_output_aliases=({0: 0} if alias else {}),
        compiler_params=pltpu.CompilerParams(
            dimension_semantics=("parallel",),
            vmem_limit_bytes=32 * 1024 * 1024,
        ),
    )(x2d)


# ----------------------------------------------------------------------------
# Forward wrapper: choose a zero-copy tiling of the original array
# ----------------------------------------------------------------------------
def _multispike_forward(x):
    orig_shape = x.shape
    n = x.size
    if n == 0:
        return x

    dtype = x.dtype
    itemsize = jnp.dtype(dtype).itemsize
    sub = _sublane_multiple(dtype)

    # Fast path: flat size is a multiple of 8*128 -> free reshape to a
    # lane-dense [rows, 1024] slab; no pad, no slice, donate the input.
    if n % _LANE_COLS == 0:
        rows, cols = n // _LANE_COLS, _LANE_COLS
        out2d = _call_tiled(x.reshape(rows, cols), rows, cols, dtype, alias=True)
        return out2d.reshape(orig_shape)

    # General path: tile the original array. Collapse leading dims (free
    # reshape) and block the FULL last dim; partially masked stores on a
    # non-128-multiple last dim beat an extra pad + slice HBM pass.
    if (x.ndim >= 2 and orig_shape[-1] >= 256
            and orig_shape[-1] * itemsize * sub <= _MAX_TILE_BYTES):
        cols = orig_shape[-1]
        rows = n // cols
        out2d = _call_tiled(x.reshape(rows, cols), rows, cols, dtype, alias=True)
        return out2d.reshape(orig_shape)

    # Fallback (tiny last dim / awkward flat size): pad to a lane-dense
    # [rows, 1024] layout. Costs one extra pad + slice pass; only small or
    # odd-shaped tensors land here.
    cols = _LANE_COLS
    rows = pl.cdiv(n, cols)
    xf = jnp.pad(jnp.ravel(x), (0, rows * cols - n))
    out2d = _call_tiled(xf.reshape(rows, cols), rows, cols, dtype, alias=False)
    return out2d.reshape(-1)[:n].reshape(orig_shape)


# ----------------------------------------------------------------------------
# custom_vjp: forward = Pallas kernel, backward = surrogate rectangular window
# (d/dx [multispike.apply(4x, lens)/4] -> grad * 1{0 < 4x < lens})
# ----------------------------------------------------------------------------
@partial(jax.custom_vjp, nondiff_argnums=(1,))
def _multispike_core(x, lens):
    return _multispike_forward(x)


def _multispike_vjp_fwd(x, lens):
    return _multispike_forward(x), x


def _multispike_vjp_bwd(lens, x, g):
    u = 4.0 * x.astype(jnp.float32)
    mask = jnp.logical_and(u > 0.0, u < float(lens)).astype(jnp.float32)
    return ((g.astype(jnp.float32) * mask).astype(x.dtype),)


_multispike_core.defvjp(_multispike_vjp_fwd, _multispike_vjp_bwd)


def multispike(x, lens=4):
    """Multispike(x) = floor(clamp(4x, 0, 4) + 0.5) / 4, with surrogate gradient."""
    return _multispike_core(x, lens)


# ----------------------------------------------------------------------------
# Self-test
# ----------------------------------------------------------------------------
if __name__ == "__main__":
    key = jax.random.PRNGKey(0)
    k1, k2, k3 = jax.random.split(key, 3)

    def ref_fwd(t):
        return jnp.floor(jnp.clip(4.0 * t, 0.0, 4.0) + 0.5) / 4.0

    # Small NCHW-like activation map: n % 1024 == 0 -> no-pad fast path.
    x1 = jax.random.normal(k1, (2, 4, 16, 16), jnp.float32)
    # Last dim >= 256, n not a multiple of 1024 -> tile the original array.
    x2 = 0.5 * jax.random.normal(k2, (3, 40, 700), jnp.float32)
    # Tiny last dim, awkward size -> padded fallback path.
    x3 = jax.random.normal(k3, (5, 7, 13), jnp.float32)

    for x in (x1, x2, x3):
        y = jax.block_until_ready(multispike(x))
        r = ref_fwd(x)
        assert y.shape == x.shape
        assert y.dtype == x.dtype
        assert bool(jnp.all(jnp.isfinite(y)))
        assert bool(jnp.all(jnp.abs(y - r) <= 1e-6))

    # Surrogate-gradient backward: grad = 1{0 < x < lens/4} (lens = 4).
    g = jax.block_until_ready(jax.grad(lambda t: jnp.sum(multispike(t)))(x1))
    g_ref = jnp.logical_and(x1 > 0.0, x1 < 1.0).astype(jnp.float32)
    assert bool(jnp.all(jnp.abs(g - g_ref) <= 1e-6))

    print("KERNEL_OK")
</pallas_src>

<mosaic_0001>
module attributes {stable_mosaic.version = 11 : i64} {
  func.func @_multispike_kernel(%arg0: i32, %arg1: memref<2x1024xf32, #tpu.memory_space<vmem>>, %arg2: memref<2x1024xf32, #tpu.memory_space<vmem>>) attributes {dimension_semantics = [#tpu.dimension_semantics<parallel>], iteration_bounds = array<i64: 1>, scalar_prefetch = 0 : i64, scratch_operands = 0 : i64, tpu.core_type = #tpu.core_type<tc>, window_params = [{transform_indices = @transform_0, window_bounds = array<i64: 2, 1024>}, {transform_indices = @transform_1, window_bounds = array<i64: 2, 1024>}]} {
    %c0 = arith.constant 0 : index
    %c0_0 = arith.constant 0 : index
    %0 = vector.load %arg1[%c0, %c0_0] : memref<2x1024xf32, #tpu.memory_space<vmem>>, vector<2x1024xf32>
    %cst = arith.constant 4.000000e+00 : f32
    %1 = vector.broadcast %cst : f32 to vector<2x1024xf32>
    %2 = arith.mulf %1, %0 : vector<2x1024xf32>
    %cst_1 = arith.constant 0.000000e+00 : f32
    %cst_2 = arith.constant 4.000000e+00 : f32
    %3 = vector.broadcast %cst_1 : f32 to vector<2x1024xf32>
    %4 = arith.maximumf %3, %2 : vector<2x1024xf32>
    %5 = vector.broadcast %cst_2 : f32 to vector<2x1024xf32>
    %6 = arith.minimumf %5, %4 : vector<2x1024xf32>
    %cst_3 = arith.constant 5.000000e-01 : f32
    %7 = vector.broadcast %cst_3 : f32 to vector<2x1024xf32>
    %8 = arith.addf %6, %7 : vector<2x1024xf32>
    %9 = math.floor %8 : vector<2x1024xf32>
    %cst_4 = arith.constant 2.500000e-01 : f32
    %10 = vector.broadcast %cst_4 : f32 to vector<2x1024xf32>
    %11 = arith.mulf %9, %10 : vector<2x1024xf32>
    %c0_5 = arith.constant 0 : index
    %c0_6 = arith.constant 0 : index
    %12 = vector.load %arg2[%c0_5, %c0_6] : memref<2x1024xf32, #tpu.memory_space<vmem>>, vector<2x1024xf32>
    tpu.vector_store %arg2[%c0_5, %c0_6], %11 {strides = array<i32>} : memref<2x1024xf32, #tpu.memory_space<vmem>>, vector<2x1024xf32>,
    return
  }
  func.func @transform_0(%arg0: i32) -> (i32, i32) {
    %c0_i32 = arith.constant 0 : i32
    %c0_i32_0 = arith.constant 0 : i32
    return %arg0, %c0_i32 : i32, i32
  }
  func.func @transform_1(%arg0: i32) -> (i32, i32) {
    %c0_i32 = arith.constant 0 : i32
    %c0_i32_0 = arith.constant 0 : i32
    return %arg0, %c0_i32 : i32, i32
  }
}

</mosaic_0001>

<bundles_post_ra>
// kernel: tpu_custom_call.1
= control target key start
LH: loop header
LB: loop body
LE: loop exit
PB: predicated region body
PF: predicated region fallthrough
CT: control target
= control target key end

     0   :  { %6 = vsyncpa [#allocation3], 0  ;;  %s138_s0 = inlined_call_operand.hbm [shape: f32[2,1024], index: 0, kind: input, shape index: {}, may-alias: {0,1}]   ;;  %s139_s1 = inlined_call_operand.hbm [shape: f32[2,1024], index: 1, kind: output, shape index: {}, may-alias: {0,1}]  }
   0x1   :  { %7 = vsyncpa [#allocation4], 0  ;;  %s102_s6 = smov [#allocation2]   ;;  %s54_s10 = scalar_lea.hbm %s138_s0, 256 }
   0x2   :  { %s14_s7 = sshll.u32 %s102_s6, 4  ;;  %p55_p0 = scmp.ne.s32.totalorder %s138_s0, %s54_s10  ;;  %s15_s7 = int_to_ptr.vmem [resolvable:$true] %s14_s7 }
   0x3   :  { %p58_p1 = scmp.lt.u32.totalorder %s54_s10, %s138_s0 }
   0x5   :  { %p60_p2 = pnand %p58_p1, %p55_p0 }
   0x7   :  { %63 = shalt.err (!%p60_p2)
}
   0x8   :  { %s64_s15 = scalar_lea.vmem %s15_s7, 256  ;;  %p69_p4 = scmp.lt.s32.totalorder %s15_s7, %s15_s7 }
   0x9   :  { %p65_p3 = scmp.ne.s32.totalorder %s15_s7, %s64_s15  ;;  %p70_p5 = scmp.lt.s32.totalorder %s64_s15, %s64_s15 }
   0xb   :  { %p71_p6 = por %p70_p5, %p69_p4 }
   0xd   :  { %p72_p7 = pnand %p71_p6, %p65_p3 }
   0xf   :  { %75 = shalt.err (!%p72_p7)
}
  0x10   :  { %17 = dma.hbm_to_vmem [thread:$0]  %s138_s0, 256, %s15_s7, [#allocation3]  }
  0x11   :  { %98 = dma.done.wait [#allocation3], 256  }
  0x12   :  { %99 = vsyncadd [#allocation3], 4294967040  ;;  %v21_v0 = vld [vmem:[#allocation2] sm:$0xff]  ;;  %v22_v1 = vld [vmem:[#allocation2 + $0x8] sm:$0xff]  ;;  %s103_s18 = smov [#allocation5]  }
  0x13   :  { %v23_v2 = vmul.f32 4.0, %v21_v0  ;;  %v24_v3 = vmul.f32 4.0, %v22_v1  ;;  %s43_s19 = sshll.u32 %s103_s18, 4  ;;  %s44_s19 = int_to_ptr.vmem [resolvable:$true] %s43_s19 }
  0x14   :  { %s76_s0 = scalar_lea.vmem %s44_s19, 256  ;;  %p81_p9 = scmp.lt.s32.totalorder %s44_s19, %s44_s19 }
  0x15   :  { %v25_v4 = vmax.f32 %v23_v2, 0.0  ;;  %v26_v5 = vmax.f32 %v24_v3, 0.0  ;;  %p77_p8 = scmp.ne.s32.totalorder %s44_s19, %s76_s0  ;;  %p82_p10 = scmp.lt.s32.totalorder %s76_s0, %s76_s0 }
  0x17   :  { %v27_v6 = vmin.f32 %v25_v4, 4.0  ;;  %v28_v7 = vmin.f32 %v26_v5, 4.0  ;;  %p83_p11 = por %p82_p10, %p81_p9 }
  0x19   :  { %v29_v8 = vadd.f32 0.5, %v27_v6  ;;  %v30_v9 = vadd.f32 0.5, %v28_v7  ;;  %p84_p12 = pnand %p83_p11, %p77_p8 }
  0x1b   :  { %v31_v10 = vfloor.f32 %v29_v8  ;;  %v32_v11 = vfloor.f32 %v30_v9 }
  0x1d   :  { %v33_v12 = vmul.f32 0.25, %v31_v10  ;;  %v34_v13 = vmul.f32 0.25, %v32_v11 }
  0x1f   :  { %35 = vst [vmem:[#allocation5] sm:$0xff] %v33_v12  ;;  %36 = vst [vmem:[#allocation5 + $0x8] sm:$0xff] %v34_v13 }
  0x20   :  { %87 = shalt.err (!%p84_p12)
}
  0x21   :  { %s88_s22 = scalar_lea.hbm %s139_s1, 256 }
  0x22   :  { %p89_p13 = scmp.ne.s32.totalorder %s139_s1, %s88_s22  ;;  %p92_p0 = scmp.lt.u32.totalorder %s88_s22, %s139_s1 }
  0x24   :  { %p94_p1 = pnand %p92_p0, %p89_p13 }
  0x26   :  { %97 = shalt.err (!%p94_p1)
}
  0x27   :  { %46 = dma.vmem_to_hbm [thread:$0]  %s44_s19, 256, %s139_s1, [#allocation4]  }
  0x28   :  { %100 = dma.done.wait [#allocation4], 256  }
  0x29   :  { %101 = vsyncadd [#allocation4], 4294967040 }
  0x2a   :  { %50 = vsyncpa [#allocation3], 1 }
  0x2b   :  { %51 = vsyncpa [#allocation4], 1 }

</bundles_post_ra>
